<compile_context>
chip_gen: v7x
topology: tpu7x:2x2x1
jax: 0.10.0
libtpu: 0.0.40
codegen_flags: <defaults>
</compile_context>

<pallas_src>
import jax
import jax.numpy as jnp
from jax.experimental import pallas as pl
from jax.experimental.pallas import tpu as pltpu


TILE_N_MAX = 256  # MXU height on v6e/v7x; fine (two passes) on v5e's 128x128.


def _round_up(x, m):
    return (x + m - 1) // m * m


def _highway_fused_kernel(x_ref, w_ref, b_ref, o_ref):
    """One grid step == one batch tile, ALL layers.

    x_ref : (TN, D_pad)       padded input activation tile (layer-0 LHS)
    w_ref : (L, D_pad, 3*D)   full fused [Wg | Wn | Wl] weight stack (bf16)
    b_ref : (L, 1, 3*D)       full fused [bg | bn | bl] bias stack   (f32)
    o_ref : (TN, D)           output tile
    """
    d = o_ref.shape[1]
    num_layers = w_ref.shape[0]

    def layer(h, w, b):
        # Single fused MXU matmul for gate / nonlinear / linear pre-acts.
        # Activation is cast to the weight dtype (bf16) only for the MXU;
        # the accumulator and all VPU/EUP math stay f32.
        pre = jnp.dot(h.astype(w.dtype), w,
                      preferred_element_type=jnp.float32) + b
        gate = jax.nn.sigmoid(pre[:, 0:d])
        nonlin = jnp.maximum(pre[:, d:2 * d], 0.0)   # f == relu
        lin = pre[:, 2 * d:3 * d]
        return lin + gate * (nonlin - lin)           # == g*n + (1-g)*l

    # Layer 0 consumes the (possibly feature-padded) D_pad-wide input.
    h = layer(x_ref[...].astype(jnp.float32), w_ref[0], b_ref[0])

    # Layers 1..L-1 consume the D-wide activation; only the first D weight
    # rows are meaningful (rows D..D_pad are zero padding for these layers),
    # so slice them off instead of multiplying guaranteed zeros.
    def body(l, h):
        w_l = w_ref[l]                     # dynamic layer index, VMEM-resident
        return layer(h, w_l[:d, :], b_ref[l])

    h = jax.lax.fori_loop(1, num_layers, body, h, unroll=True)

    o_ref[...] = h.astype(o_ref.dtype)


@jax.jit
def highway_forward(x, w_stacked, b_stacked):
    """x: (N, input_size) f32; w_stacked: (L, D_pad, 3*D) bf16; b_stacked: (L, 1, 3*D) f32."""
    num_layers, d_pad, three_d = w_stacked.shape
    d_out = three_d // 3
    n = x.shape[0]

    # Pad layer-0 features up to D_pad (zero cols x zero weight rows == 0).
    if x.shape[1] < d_pad:
        x = jnp.pad(x, ((0, 0), (0, d_pad - x.shape[1])))

    # Batch tiling: multiple of 8 sublanes, capped at the MXU height.
    tile_n = min(TILE_N_MAX, _round_up(n, 8))
    n_pad = _round_up(n, tile_n)
    if n_pad != n:
        x = jnp.pad(x, ((0, n_pad - n), (0, 0)))

    flops = 2 * num_layers * n_pad * d_pad * three_d
    bytes_accessed = (x.size * x.dtype.itemsize
                      + w_stacked.size * w_stacked.dtype.itemsize
                      + b_stacked.size * b_stacked.dtype.itemsize
                      + n_pad * d_out * x.dtype.itemsize)

    out = pl.pallas_call(
        _highway_fused_kernel,
        out_shape=jax.ShapeDtypeStruct((n_pad, d_out), x.dtype),
        grid_spec=pltpu.PrefetchScalarGridSpec(
            num_scalar_prefetch=0,
            grid=(n_pad // tile_n,),
            in_specs=[
                # Per-tile layer-0 LHS (only read once per tile).
                pl.BlockSpec((tile_n, d_pad), lambda i: (i, 0)),
                # Whole weight / bias stacks: constant index_map -> fetched
                # once and kept resident in VMEM across all batch tiles.
                pl.BlockSpec((num_layers, d_pad, three_d), lambda i: (0, 0, 0)),
                pl.BlockSpec((num_layers, 1, three_d), lambda i: (0, 0, 0)),
            ],
            out_specs=pl.BlockSpec((tile_n, d_out), lambda i: (i, 0)),
        ),
        compiler_params=pltpu.CompilerParams(
            # Independent batch tiles -> megacore-shardable (2 TCs on v7x).
            dimension_semantics=("parallel",),
        ),
        cost_estimate=pl.CostEstimate(
            flops=flops,
            transcendentals=num_layers * n_pad * d_out,   # sigmoid exps
            bytes_accessed=bytes_accessed,
        ),
    )(x, w_stacked, b_stacked)
    return out[:n]


# ------------------------- params / reference ------------------------------

def xavier_normal(key, fan_in, fan_out, dtype=jnp.float32):
    std = (2.0 / (fan_in + fan_out)) ** 0.5
    return std * jax.random.normal(key, (fan_in, fan_out), dtype=dtype)


def init_highway_params(key, input_size, output_size, num_layers):
    """Mirrors Highway.reset_parameters: xavier_normal weights, zero biases.

    Returns per-layer (wg, bg, wn, bn, wl, bl) with weights as (d_in, d_out).
    """
    params = []
    for i in range(num_layers):
        d_in = output_size if i else input_size
        key, kg, kn, kl = jax.random.split(key, 4)
        wg = xavier_normal(kg, d_in, output_size)
        wn = xavier_normal(kn, d_in, output_size)
        wl = xavier_normal(kl, d_in, output_size)
        zb = jnp.zeros((output_size,), jnp.float32)
        params.append((wg, zb, wn, zb, wl, zb))
    return params


def pack_params(params, input_size, output_size, weight_dtype=jnp.bfloat16):
    """Stack per-layer params into (L, D_pad, 3*D) bf16 weights + (L, 1, 3*D) f32 biases.

    Weight rows beyond each layer's true fan-in are zero-padded; the kernel
    relies on this only for layer 0 (layers >= 1 slice the first D rows).
    """
    d_pad = max(input_size, output_size)
    ws, bs = [], []
    for wg, bg, wn, bn, wl, bl in params:
        w = jnp.concatenate([wg, wn, wl], axis=1)             # (d_in, 3*D)
        w = jnp.pad(w, ((0, d_pad - w.shape[0]), (0, 0)))     # (D_pad, 3*D)
        b = jnp.concatenate([bg, bn, bl])[None, :]            # (1, 3*D)
        ws.append(w.astype(weight_dtype))
        bs.append(b.astype(jnp.float32))
    return jnp.stack(ws), jnp.stack(bs)


def highway_ref(x, w_stacked, b_stacked):
    """Pure-JAX reference with the PyTorch forward semantics (f = relu) and the
    same numerics as the kernel: bf16 weights, activation cast to the weight
    dtype for the matmul, f32 accumulation and f32 gate/blend math."""
    num_layers, d_pad, three_d = w_stacked.shape
    d = three_d // 3
    h = x.astype(jnp.float32)
    if h.shape[1] < d_pad:
        h = jnp.pad(h, ((0, 0), (0, d_pad - h.shape[1])))
    for l in range(num_layers):
        w = w_stacked[l] if l == 0 else w_stacked[l, :d, :]
        pre = jnp.dot(h.astype(w.dtype), w,
                      preferred_element_type=jnp.float32) + b_stacked[l, 0]
        gate = jax.nn.sigmoid(pre[:, :d])
        nonlinear = jnp.maximum(pre[:, d:2 * d], 0.0)
        linear = pre[:, 2 * d:]
        h = gate * nonlinear + (1.0 - gate) * linear
    return h


if __name__ == "__main__":
    key = jax.random.PRNGKey(0)

    def run_case(key, batch, d_in, d_out, n_layers):
        key, kx, kp = jax.random.split(key, 3)
        x = jax.random.normal(kx, (batch, d_in), dtype=jnp.float32)
        params = init_highway_params(kp, d_in, d_out, n_layers)
        w_st, b_st = pack_params(params, d_in, d_out)

        out = jax.block_until_ready(highway_forward(x, w_st, b_st))
        ref = highway_ref(x, w_st, b_st)
        assert out.shape == (batch, d_out), (out.shape, (batch, d_out))
        # Same bf16-weight numerics on both sides; only the blend rewrite and
        # accumulation order differ -> modest tolerance.
        assert jnp.allclose(out, ref, atol=1e-2, rtol=1e-2), (
            float(jnp.max(jnp.abs(out - ref))))
        return key

    # Case 1: lane-dense square highway (input_size == output_size == 128).
    key = run_case(key, batch=8, d_in=128, d_out=128, n_layers=3)
    # Case 2: layer 0 widens (input_size < output_size) via zero-pad.
    key = run_case(key, batch=16, d_in=96, d_out=128, n_layers=2)
    # Case 3: input_size > output_size (padded K only on layer 0) and a batch
    #         that is not a sublane multiple (padded to 8, sliced back).
    key = run_case(key, batch=5, d_in=160, d_out=128, n_layers=2)

    print("KERNEL_OK")
</pallas_src>

<mosaic_0001>
module attributes {stable_mosaic.version = 11 : i64} {
  func.func @_highway_fused_kernel(%arg0: i32, %arg1: memref<8x128xf32, #tpu.memory_space<vmem>>, %arg2: memref<3x128x384xbf16, #tpu.memory_space<vmem>>, %arg3: memref<3x1x384xf32, #tpu.memory_space<vmem>>, %arg4: memref<8x128xf32, #tpu.memory_space<vmem>>) attributes {dimension_semantics = [#tpu.dimension_semantics<parallel>], iteration_bounds = array<i64: 1>, scalar_prefetch = 0 : i64, scratch_operands = 0 : i64, tpu.core_type = #tpu.core_type<tc>, window_params = [{transform_indices = @transform_0, window_bounds = array<i64: 8, 128>}, {pipeline_mode = #tpu.pipeline_mode<synchronous>, transform_indices = @transform_1, window_bounds = array<i64: 3, 128, 384>}, {pipeline_mode = #tpu.pipeline_mode<synchronous>, transform_indices = @transform_2, window_bounds = array<i64: 3, 1, 384>}, {transform_indices = @transform_3, window_bounds = array<i64: 8, 128>}]} {
    %c0 = arith.constant 0 : index
    %c0_0 = arith.constant 0 : index
    %0 = vector.load %arg1[%c0, %c0_0] : memref<8x128xf32, #tpu.memory_space<vmem>>, vector<8x128xf32>
    %c0_1 = arith.constant 0 : index
    %c0_2 = arith.constant 0 : index
    %c0_3 = arith.constant 0 : index
    %1 = vector.load %arg2[%c0_1, %c0_2, %c0_3] : memref<3x128x384xbf16, #tpu.memory_space<vmem>>, vector<1x128x384xbf16>
    %2 = vector.shape_cast %1 : vector<1x128x384xbf16> to vector<128x384xbf16>
    %c0_4 = arith.constant 0 : index
    %c0_5 = arith.constant 0 : index
    %c0_6 = arith.constant 0 : index
    %3 = vector.load %arg3[%c0_4, %c0_5, %c0_6] : memref<3x1x384xf32, #tpu.memory_space<vmem>>, vector<1x1x384xf32>
    %4 = vector.shape_cast %3 : vector<1x1x384xf32> to vector<1x384xf32>
    %5 = arith.truncf %0 : vector<8x128xf32> to vector<8x128xbf16>
    %cst = arith.constant dense<0.000000e+00> : vector<8x384xf32>
    %6 = tpu.matmul %5, %2, %cst {dimension_numbers = #tpu.dot_dimension_numbers<[1], [0], [0], [1], [0, 0, 1, 1], [], []>} : vector<8x128xbf16>, vector<128x384xbf16>, vector<8x384xf32> -> vector<8x384xf32>
    %7 = vector.broadcast %4 : vector<1x384xf32> to vector<8x384xf32>
    %8 = arith.addf %6, %7 : vector<8x384xf32>
    %9 = vector.extract_strided_slice %8 {offsets = [0, 0], sizes = [8, 128], strides = [1, 1]} : vector<8x384xf32> to vector<8x128xf32>
    %10 = arith.negf %9 : vector<8x128xf32>
    %11 = math.exp %10 : vector<8x128xf32>
    %cst_7 = arith.constant 1.000000e+00 : f32
    %12 = vector.broadcast %cst_7 : f32 to vector<8x128xf32>
    %13 = arith.addf %12, %11 : vector<8x128xf32>
    %14 = arith.divf %12, %13 : vector<8x128xf32>
    %15 = vector.extract_strided_slice %8 {offsets = [0, 128], sizes = [8, 128], strides = [1, 1]} : vector<8x384xf32> to vector<8x128xf32>
    %cst_8 = arith.constant 0.000000e+00 : f32
    %16 = vector.broadcast %cst_8 : f32 to vector<8x128xf32>
    %17 = arith.maximumf %15, %16 : vector<8x128xf32>
    %18 = vector.extract_strided_slice %8 {offsets = [0, 256], sizes = [8, 128], strides = [1, 1]} : vector<8x384xf32> to vector<8x128xf32>
    %19 = arith.subf %17, %18 : vector<8x128xf32>
    %20 = arith.mulf %14, %19 : vector<8x128xf32>
    %21 = arith.addf %18, %20 : vector<8x128xf32>
    %c1_i32 = arith.constant 1 : i32
    %22 = arith.index_cast %c1_i32 : i32 to index
    %c0_9 = arith.constant 0 : index
    %c0_10 = arith.constant 0 : index
    %23 = vector.load %arg2[%22, %c0_9, %c0_10] : memref<3x128x384xbf16, #tpu.memory_space<vmem>>, vector<1x128x384xbf16>
    %24 = vector.shape_cast %23 : vector<1x128x384xbf16> to vector<128x384xbf16>
    %25 = arith.index_cast %c1_i32 : i32 to index
    %c0_11 = arith.constant 0 : index
    %c0_12 = arith.constant 0 : index
    %26 = vector.load %arg3[%25, %c0_11, %c0_12] : memref<3x1x384xf32, #tpu.memory_space<vmem>>, vector<1x1x384xf32>
    %27 = vector.shape_cast %26 : vector<1x1x384xf32> to vector<1x384xf32>
    %28 = arith.truncf %21 : vector<8x128xf32> to vector<8x128xbf16>
    %cst_13 = arith.constant dense<0.000000e+00> : vector<8x384xf32>
    %29 = tpu.matmul %28, %24, %cst_13 {dimension_numbers = #tpu.dot_dimension_numbers<[1], [0], [0], [1], [0, 0, 1, 1], [], []>} : vector<8x128xbf16>, vector<128x384xbf16>, vector<8x384xf32> -> vector<8x384xf32>
    %30 = vector.broadcast %27 : vector<1x384xf32> to vector<8x384xf32>
    %31 = arith.addf %29, %30 : vector<8x384xf32>
    %32 = vector.extract_strided_slice %31 {offsets = [0, 0], sizes = [8, 128], strides = [1, 1]} : vector<8x384xf32> to vector<8x128xf32>
    %33 = arith.negf %32 : vector<8x128xf32>
    %34 = math.exp %33 : vector<8x128xf32>
    %cst_14 = arith.constant 1.000000e+00 : f32
    %35 = vector.broadcast %cst_14 : f32 to vector<8x128xf32>
    %36 = arith.addf %35, %34 : vector<8x128xf32>
    %37 = arith.divf %35, %36 : vector<8x128xf32>
    %38 = vector.extract_strided_slice %31 {offsets = [0, 128], sizes = [8, 128], strides = [1, 1]} : vector<8x384xf32> to vector<8x128xf32>
    %cst_15 = arith.constant 0.000000e+00 : f32
    %39 = vector.broadcast %cst_15 : f32 to vector<8x128xf32>
    %40 = arith.maximumf %38, %39 : vector<8x128xf32>
    %41 = vector.extract_strided_slice %31 {offsets = [0, 256], sizes = [8, 128], strides = [1, 1]} : vector<8x384xf32> to vector<8x128xf32>
    %42 = arith.subf %40, %41 : vector<8x128xf32>
    %43 = arith.mulf %37, %42 : vector<8x128xf32>
    %44 = arith.addf %41, %43 : vector<8x128xf32>
    %c2_i32 = arith.constant 2 : i32
    %45 = arith.index_cast %c2_i32 : i32 to index
    %c0_16 = arith.constant 0 : index
    %c0_17 = arith.constant 0 : index
    %46 = vector.load %arg2[%45, %c0_16, %c0_17] : memref<3x128x384xbf16, #tpu.memory_space<vmem>>, vector<1x128x384xbf16>
    %47 = vector.shape_cast %46 : vector<1x128x384xbf16> to vector<128x384xbf16>
    %48 = arith.index_cast %c2_i32 : i32 to index
    %c0_18 = arith.constant 0 : index
    %c0_19 = arith.constant 0 : index
    %49 = vector.load %arg3[%48, %c0_18, %c0_19] : memref<3x1x384xf32, #tpu.memory_space<vmem>>, vector<1x1x384xf32>
    %50 = vector.shape_cast %49 : vector<1x1x384xf32> to vector<1x384xf32>
    %51 = arith.truncf %44 : vector<8x128xf32> to vector<8x128xbf16>
    %cst_20 = arith.constant dense<0.000000e+00> : vector<8x384xf32>
    %52 = tpu.matmul %51, %47, %cst_20 {dimension_numbers = #tpu.dot_dimension_numbers<[1], [0], [0], [1], [0, 0, 1, 1], [], []>} : vector<8x128xbf16>, vector<128x384xbf16>, vector<8x384xf32> -> vector<8x384xf32>
    %53 = vector.broadcast %50 : vector<1x384xf32> to vector<8x384xf32>
    %54 = arith.addf %52, %53 : vector<8x384xf32>
    %55 = vector.extract_strided_slice %54 {offsets = [0, 0], sizes = [8, 128], strides = [1, 1]} : vector<8x384xf32> to vector<8x128xf32>
    %56 = arith.negf %55 : vector<8x128xf32>
    %57 = math.exp %56 : vector<8x128xf32>
    %cst_21 = arith.constant 1.000000e+00 : f32
    %58 = vector.broadcast %cst_21 : f32 to vector<8x128xf32>
    %59 = arith.addf %58, %57 : vector<8x128xf32>
    %60 = arith.divf %58, %59 : vector<8x128xf32>
    %61 = vector.extract_strided_slice %54 {offsets = [0, 128], sizes = [8, 128], strides = [1, 1]} : vector<8x384xf32> to vector<8x128xf32>
    %cst_22 = arith.constant 0.000000e+00 : f32
    %62 = vector.broadcast %cst_22 : f32 to vector<8x128xf32>
    %63 = arith.maximumf %61, %62 : vector<8x128xf32>
    %64 = vector.extract_strided_slice %54 {offsets = [0, 256], sizes = [8, 128], strides = [1, 1]} : vector<8x384xf32> to vector<8x128xf32>
    %65 = arith.subf %63, %64 : vector<8x128xf32>
    %66 = arith.mulf %60, %65 : vector<8x128xf32>
    %67 = arith.addf %64, %66 : vector<8x128xf32>
    %c2_i32_23 = arith.constant 2 : i32
    %c0_24 = arith.constant 0 : index
    %c0_25 = arith.constant 0 : index
    %68 = vector.load %arg4[%c0_24, %c0_25] : memref<8x128xf32, #tpu.memory_space<vmem>>, vector<8x128xf32>
    tpu.vector_store %arg4[%c0_24, %c0_25], %67 {strides = array<i32>} : memref<8x128xf32, #tpu.memory_space<vmem>>, vector<8x128xf32>,
    return
  }
  func.func @transform_0(%arg0: i32) -> (i32, i32) {
    %c0_i32 = arith.constant 0 : i32
    %c0_i32_0 = arith.constant 0 : i32
    return %arg0, %c0_i32 : i32, i32
  }
  func.func @transform_1(%arg0: i32) -> (i32, i32, i32) {
    %c0_i32 = arith.constant 0 : i32
    %c0_i32_0 = arith.constant 0 : i32
    %c0_i32_1 = arith.constant 0 : i32
    %c0_i32_2 = arith.constant 0 : i32
    return %c0_i32, %c0_i32_0, %c0_i32_1 : i32, i32, i32
  }
  func.func @transform_2(%arg0: i32) -> (i32, i32, i32) {
    %c0_i32 = arith.constant 0 : i32
    %c0_i32_0 = arith.constant 0 : i32
    %c0_i32_1 = arith.constant 0 : i32
    %c0_i32_2 = arith.constant 0 : i32
    return %c0_i32, %c0_i32_0, %c0_i32_1 : i32, i32, i32
  }
  func.func @transform_3(%arg0: i32) -> (i32, i32) {
    %c0_i32 = arith.constant 0 : i32
    %c0_i32_0 = arith.constant 0 : i32
    return %arg0, %c0_i32 : i32, i32
  }
}

</mosaic_0001>

<bundles_post_ra>
// kernel: highway_forward.1
= control target key start
LH: loop header
LB: loop body
LE: loop exit
PB: predicated region body
PF: predicated region fallthrough
CT: control target
= control target key end

     0   :  { %8 = vsyncpa [#allocation3], 0  ;;  %s1386_s0 = inlined_call_operand.hbm [shape: f32[8,128], index: 0, kind: input, shape index: {}]   ;;  %s1387_s1 = inlined_call_operand.hbm [shape: bf16[3,128,384], index: 1, kind: input, shape index: {}]   ;;  %s1388_s2 = inlined_call_operand.hbm [shape: f32[3,1,384], index: 2, kind: input, shape index: {}]   ;;  %s1389_s3 = inlined_call_operand.hbm [shape: f32[8,128], index: 3, kind: output, shape index: {}]  }
   0x1   :  { %9 = vsyncpa [#allocation6], 0 }
   0x2   :  { %10 = vsyncpa [#allocation4], 0  ;;  %s1259_s12 = smov [#allocation5]   ;;  %s1165_s16 = scalar_lea.hbm %s1387_s1, 9216 }
   0x3   :  { %s26_s13 = sshll.u32 %s1259_s12, 4  ;;  %p1166_p0 = scmp.ne.s32.totalorder %s1387_s1, %s1165_s16  ;;  %s27_s13 = int_to_ptr.vmem [resolvable:$true] %s26_s13 }
   0x4   :  { %p1169_p1 = scmp.lt.u32.totalorder %s1165_s16, %s1387_s1 }
   0x6   :  { %p1171_p2 = pnand %p1169_p1, %p1166_p0 }
   0x8   :  { %1174 = shalt.err (!%p1171_p2)
}
   0x9   :  { %s1175_s21 = scalar_lea.vmem %s27_s13, 9216  ;;  %p1180_p4 = scmp.lt.s32.totalorder %s27_s13, %s27_s13 }
   0xa   :  { %p1176_p3 = scmp.ne.s32.totalorder %s27_s13, %s1175_s21  ;;  %p1181_p5 = scmp.lt.s32.totalorder %s1175_s21, %s1175_s21 }
   0xc   :  { %p1182_p6 = por %p1181_p5, %p1180_p4 }
   0xe   :  { %p1183_p7 = pnand %p1182_p6, %p1176_p3 }
  0x10   :  { %1186 = shalt.err (!%p1183_p7)
}
  0x11   :  { %s1260_s22 = smov 192   ;;  %s1261_s23 = smov 12  }
  0x12   :  { %32 = dma.hbm_to_vmem [thread:$0]  %s1387_s1, 9216, %s27_s13, [#allocation6], %s1260_s22, %s1260_s22, %s1261_s23  }
  0x13   :  { %s1262_s26 = smov [#allocation2]   ;;  %s1263_s28 = smov [#allocation7]  }
  0x14   :  { %s17_s27 = sshll.u32 %s1262_s26, 4  ;;  %s38_s29 = sshll.u32 %s1263_s28, 4  ;;  %s18_s27 = int_to_ptr.vmem [resolvable:$true] %s17_s27  ;;  %s39_s29 = int_to_ptr.vmem [resolvable:$true] %s38_s29 }
  0x15   :  { %s1187_s5 = scalar_lea.hbm %s1386_s0, 128 }
  0x16   :  { %p1188_p8 = scmp.ne.s32.totalorder %s1386_s0, %s1187_s5  ;;  %p1191_p9 = scmp.lt.u32.totalorder %s1187_s5, %s1386_s0 }
  0x18   :  { %p1193_p10 = pnand %p1191_p9, %p1188_p8 }
  0x1a   :  { %1196 = shalt.err (!%p1193_p10)
}
  0x1b   :  { %s1197_s1 = scalar_lea.vmem %s18_s27, 128  ;;  %p1202_p12 = scmp.lt.s32.totalorder %s18_s27, %s18_s27 }
  0x1c   :  { %p1198_p11 = scmp.ne.s32.totalorder %s18_s27, %s1197_s1  ;;  %p1203_p13 = scmp.lt.s32.totalorder %s1197_s1, %s1197_s1 }
  0x1e   :  { %p1204_p0 = por %p1203_p13, %p1202_p12 }
  0x20   :  { %p1205_p1 = pnand %p1204_p0, %p1198_p11 }
  0x22   :  { %1208 = shalt.err (!%p1205_p1)
}
  0x23   :  { %20 = dma.hbm_to_vmem [thread:$0]  %s1386_s0, 128, %s18_s27, [#allocation3]  }
  0x24   :  { %s1209_s14 = scalar_lea.hbm %s1388_s2, 144 }
  0x25   :  { %p1210_p2 = scmp.ne.s32.totalorder %s1388_s2, %s1209_s14  ;;  %p1213_p3 = scmp.lt.u32.totalorder %s1209_s14, %s1388_s2 }
  0x27   :  { %p1215_p4 = pnand %p1213_p3, %p1210_p2 }
  0x29   :  { %1218 = shalt.err (!%p1215_p4)
}
  0x2a   :  { %s1219_s19 = scalar_lea.vmem %s39_s29, 144  ;;  %s1223_s20 = scalar_lea.vmem %s39_s29, 160 }
  0x2b   :  { %p1220_p5 = scmp.ne.s32.totalorder %s39_s29, %s1219_s19  ;;  %p1224_p6 = scmp.lt.s32.totalorder %s39_s29, %s39_s29 }
  0x2c   :  { %p1225_p7 = scmp.lt.s32.totalorder %s1223_s20, %s1219_s19 }
  0x2e   :  { %p1226_p8 = por %p1225_p7, %p1224_p6 }
  0x30   :  { %p1227_p9 = pnand %p1226_p8, %p1220_p5 }
  0x32   :  { %1230 = shalt.err (!%p1227_p9)
}
  0x33   :  { %s1264_s0 = smov 48   ;;  %s1265_s21 = smov 3  }
  0x34   :  { %44 = dma.hbm_to_vmem [thread:$0]  %s1388_s2, 144, %s39_s29, [#allocation6], %s1264_s0, %s1264_s0, %s1265_s21  }
  0x35   :  { %1253 = dma.done.wait [#allocation3], 128  }
  0x36   :  { %1254 = vsyncadd [#allocation3], 4294967168 }
  0x37   :  { %1255 = dma.done.wait [#allocation6], 9360  }
  0x38   :  { %1256 = vsyncadd [#allocation6], 4294957936  ;;  %v1266_v0 = vmov 0.0   ;;  %v1267_v1 = vmov 0   ;;  %vm1268_vm0 = vmmov 0   ;;  %v55_v25 = vld [vmem:[#allocation2] sm:$0xff]  ;;  %v91_v52 = vlaneseq }
  0x39   :  { %986 = vmatprep.subr.bf16.mxu1 %v1266_v0  ;;  %266 = vmatprep.mubr.bf16.mxu0 %v1267_v1  ;;  %v1057_v2 = vld [vmem:[#allocation5 + $0x4] ss:$12 sps:$4 sm:$0xff]   ;;  %v1059_v3 = vld [vmem:[#allocation5] ss:$12 sps:$4 sm:$0xff]   ;;  %v1060_v4 = vld [vmem:[#allocation5 + $0x1c] ss:$12 sps:$4 sm:$0xff]   ;;  %v89_v27 = vpack.c.bf16 %v55_v25, %v55_v25 }
  0x3a   :  { %1002 = vmatprep.mubr.msk.bf16.mxu1 %vm1268_vm0, %v1266_v0  ;;  %234 = vmatprep.subr.bf16.mxu0 %v1057_v2  ;;  %v1062_v5 = vld [vmem:[#allocation5 + $0x8] ss:$12 sps:$4 sm:$0xff]   ;;  %v1063_v6 = vld [vmem:[#allocation5 + $0x18] ss:$12 sps:$4 sm:$0xff]   ;;  %v1066_v8 = vld [vmem:[#allocation5 + $0x20] ss:$12 sps:$4 sm:$0xff]  }
  0x3b   :  { %235 = vmatpush1.bf16.msra.mxu0 %v1059_v3  ;;  %v1064_v7 = vld [vmem:[#allocation5 + $0x34] ss:$12 sps:$4 sm:$0xff]   ;;  %987 = vmatpush3.bf16.msra.mxu1 %v1062_v5  ;;  %v1067_v9 = vld [vmem:[#allocation5 + $0x30] ss:$12 sps:$4 sm:$0xff]   ;;  %v1068_v10 = vld [vmem:[#allocation5 + $0x4c] ss:$12 sps:$4 sm:$0xff]  }
  0x3c   :  { %236 = vmatprep.subr.bf16.mxu0 %v1060_v4  ;;  %988 = vmatprep.subr.bf16.mxu1 %v1266_v0  ;;  %v1070_v11 = vld [vmem:[#allocation5 + $0x38] ss:$12 sps:$4 sm:$0xff]   ;;  %v1071_v12 = vld [vmem:[#allocation5 + $0x48] ss:$12 sps:$4 sm:$0xff]   ;;  %v1074_v14 = vld [vmem:[#allocation5 + $0x50] ss:$12 sps:$4 sm:$0xff]  }
  0x3d   :  { %v1072_v13 = vld [vmem:[#allocation5 + $0x64] ss:$12 sps:$4 sm:$0xff]   ;;  %v1075_v15 = vld [vmem:[#allocation5 + $0x60] ss:$12 sps:$4 sm:$0xff]   ;;  %v1076_v16 = vld [vmem:[#allocation5 + $0x7c] ss:$12 sps:$4 sm:$0xff]  }
  0x3e   :  { %v1078_v17 = vld [vmem:[#allocation5 + $0x68] ss:$12 sps:$4 sm:$0xff]   ;;  %v1079_v18 = vld [vmem:[#allocation5 + $0x78] ss:$12 sps:$4 sm:$0xff]   ;;  %v1082_v20 = vld [vmem:[#allocation5 + $0x80] ss:$12 sps:$4 sm:$0xff]  }
  0x3f   :  { %237 = vmatpush1.bf16.msra.mxu0 %v1063_v6  ;;  %989 = vmatpush3.bf16.msra.mxu1 %v1066_v8  ;;  %v1080_v19 = vld [vmem:[#allocation5 + $0x94] ss:$12 sps:$4 sm:$0xff]   ;;  %v1083_v21 = vld [vmem:[#allocation5 + $0x90] ss:$12 sps:$4 sm:$0xff]   ;;  %v1084_v22 = vld [vmem:[#allocation5 + $0xac] ss:$12 sps:$4 sm:$0xff]  }
  0x40   :  { %238 = vmatprep.subr.bf16.mxu0 %v1064_v7  ;;  %990 = vmatprep.subr.bf16.mxu1 %v1266_v0  ;;  %v1086_v23 = vld [vmem:[#allocation5 + $0x98] ss:$12 sps:$4 sm:$0xff]   ;;  %v1087_v24 = vld [vmem:[#allocation5 + $0xa8] ss:$12 sps:$4 sm:$0xff]   ;;  %v1088_v26 = vld [vmem:[#allocation5 + $0xb0] ss:$12 sps:$4 sm:$0xff]  }
  0x41   :  { %v1091_v28 = vld [vmem:[#allocation5 + $0xc4] ss:$12 sps:$4 sm:$0xff]   ;;  %v1089_v29 = vld [vmem:[#allocation5 + $0xc0] ss:$12 sps:$4 sm:$0xff]   ;;  %v1092_v30 = vld [vmem:[#allocation5 + $0xc8] ss:$12 sps:$4 sm:$0xff]  }
  0x42   :  { %v1095_v31 = vld [vmem:[#allocation5 + $0xdc] ss:$12 sps:$4 sm:$0xff]   ;;  %v1093_v32 = vld [vmem:[#allocation5 + $0xd8] ss:$12 sps:$4 sm:$0xff]   ;;  %v1096_v33 = vld [vmem:[#allocation5 + $0xe0] ss:$12 sps:$4 sm:$0xff]  }
  0x43   :  { %239 = vmatpush1.bf16.msra.mxu0 %v1067_v9  ;;  %991 = vmatpush3.bf16.msra.mxu1 %v1070_v11  ;;  %v1099_v34 = vld [vmem:[#allocation5 + $0xf4] ss:$12 sps:$4 sm:$0xff]   ;;  %v1097_v35 = vld [vmem:[#allocation5 + $0xf0] ss:$12 sps:$4 sm:$0xff]   ;;  %v1100_v36 = vld [vmem:[#allocation5 + $0xf8] ss:$12 sps:$4 sm:$0xff]  }
  0x44   :  { %240 = vmatprep.subr.bf16.mxu0 %v1068_v10  ;;  %992 = vmatprep.subr.bf16.mxu1 %v1266_v0  ;;  %v1103_v37 = vld [vmem:[#allocation5 + $0x10c] ss:$12 sps:$4 sm:$0xff]   ;;  %v1101_v38 = vld [vmem:[#allocation5 + $0x108] ss:$12 sps:$4 sm:$0xff]   ;;  %v1104_v39 = vld [vmem:[#allocation5 + $0x110] ss:$12 sps:$4 sm:$0xff]  }
  0x45   :  { %v1107_v40 = vld [vmem:[#allocation5 + $0x124] ss:$12 sps:$4 sm:$0xff]   ;;  %v1105_v41 = vld [vmem:[#allocation5 + $0x120] ss:$12 sps:$4 sm:$0xff]   ;;  %v1108_v42 = vld [vmem:[#allocation5 + $0x128] ss:$12 sps:$4 sm:$0xff]  }
  0x46   :  { %v1111_v43 = vld [vmem:[#allocation5 + $0x13c] ss:$12 sps:$4 sm:$0xff]   ;;  %v1109_v44 = vld [vmem:[#allocation5 + $0x138] ss:$12 sps:$4 sm:$0xff]   ;;  %v1112_v45 = vld [vmem:[#allocation5 + $0x140] ss:$12 sps:$4 sm:$0xff]  }
  0x47   :  { %241 = vmatpush1.bf16.msra.mxu0 %v1071_v12  ;;  %993 = vmatpush3.bf16.msra.mxu1 %v1074_v14  ;;  %v1115_v46 = vld [vmem:[#allocation5 + $0x154] ss:$12 sps:$4 sm:$0xff]   ;;  %v1113_v47 = vld [vmem:[#allocation5 + $0x150] ss:$12 sps:$4 sm:$0xff]   ;;  %v1116_v48 = vld [vmem:[#allocation5 + $0x158] ss:$12 sps:$4 sm:$0xff]  }
  0x48   :  { %242 = vmatprep.subr.bf16.mxu0 %v1072_v13  ;;  %994 = vmatprep.subr.bf16.mxu1 %v1266_v0  ;;  %v1119_v49 = vld [vmem:[#allocation5 + $0x16c] ss:$12 sps:$4 sm:$0xff]   ;;  %v1117_v50 = vld [vmem:[#allocation5 + $0x168] ss:$12 sps:$4 sm:$0xff]   ;;  %v1120_v51 = vld [vmem:[#allocation5 + $0x170] ss:$12 sps:$4 sm:$0xff]  }
  0x49   :  { %v92_v53 = vshrl.u32 %v91_v52, 7  ;;  %v88_v55 = vld [vmem:[#allocation7] sm:$0x7]  ;;  %s1269_s2 = smov [#allocation8]  }
  0x4a   :  { %v1131_v25 = vld [vmem:[#allocation5 + $0x1b4] ss:$12 sps:$4 sm:$0xff]   ;;  %s874_s24 = sshll.u32 %s1269_s2, 4  ;;  %s875_s24 = int_to_ptr.vmem [resolvable:$true] %s874_s24 }
  0x4b   :  { %243 = vmatpush1.bf16.msra.mxu0 %v1075_v15  ;;  %995 = vmatpush3.bf16.msra.mxu1 %v1078_v17  ;;  %v1349_v54 = vsub.s32 0, %v92_v53  ;;  %v1351_v56 = vsub.s32 1, %v92_v53  ;;  %v1353_v57 = vsub.s32 2, %v92_v53  ;;  %s1231_s25 = scalar_lea.vmem %s875_s24, 128  ;;  %p1236_p11 = scmp.lt.s32.totalorder %s875_s24, %s875_s24 }
  0x4c   :  { %244 = vmatprep.subr.bf16.mxu0 %v1076_v16  ;;  %996 = vmatprep.subr.bf16.mxu1 %v1266_v0  ;;  %p1232_p10 = scmp.ne.s32.totalorder %s875_s24, %s1231_s25  ;;  %p1237_p12 = scmp.lt.s32.totalorder %s1231_s25, %s1231_s25 }
  0x4d   :  { %v94_v58 = vrot.slane %v88_v55, %v1349_v54  ;;  %v98_v59 = vrot.slane %v88_v55, %v1351_v56  ;;  %v102_v60 = vrot.slane %v88_v55, %v1353_v57 }
  0x4e   :  { %p1238_p13 = por %p1237_p12, %p1236_p11 }
  0x4f   :  { %245 = vmatpush1.bf16.msra.mxu0 %v1079_v18  ;;  %997 = vmatpush3.bf16.msra.mxu1 %v1082_v20  ;;  %v1121_v20 = vld [vmem:[#allocation5 + $0x180] ss:$12 sps:$4 sm:$0xff]  }
  0x50   :  { %246 = vmatprep.subr.bf16.mxu0 %v1080_v19  ;;  %998 = vmatprep.subr.bf16.mxu1 %v1266_v0  ;;  %v1123_v19 = vld [vmem:[#allocation5 + $0x184] ss:$12 sps:$4 sm:$0xff]   ;;  %p1239_p0 = pnand %p1238_p13, %p1232_p10 }
  0x53   :  { %247 = vmatpush1.bf16.msra.mxu0 %v1083_v21  ;;  %999 = vmatpush3.bf16.msra.mxu1 %v1086_v23  ;;  %v1124_v21 = vld [vmem:[#allocation5 + $0x188] ss:$12 sps:$4 sm:$0xff]   ;;  %v1125_v23 = vld [vmem:[#allocation5 + $0x198] ss:$12 sps:$4 sm:$0xff]  }
  0x54   :  { %248 = vmatprep.subr.bf16.mxu0 %v1084_v22  ;;  %1000 = vmatprep.subr.bf16.mxu1 %v1266_v0  ;;  %v1127_v22 = vld [vmem:[#allocation5 + $0x19c] ss:$12 sps:$4 sm:$0xff]  }
  0x57   :  { %249 = vmatpush1.bf16.msra.mxu0 %v1087_v24  ;;  %1001 = vmatpush3.bf16.msra.mxu1 %v1088_v26  ;;  %v1128_v24 = vld [vmem:[#allocation5 + $0x1a0] ss:$12 sps:$4 sm:$0xff]   ;;  %v1132_v26 = vld [vmem:[#allocation5 + $0x1b8] ss:$12 sps:$4 sm:$0xff]  }
  0x58   :  { %1006 = vmatprep.subr.bf16.mxu1 %v1266_v0  ;;  %505 = vmatprep.subr.bf16.mxu0 %v1091_v28  ;;  %v1133_v28 = vld [vmem:[#allocation5 + $0x1c8] ss:$12 sps:$4 sm:$0xff]  }
  0x5a   :  { %267 = vmatmul.mubr.bf16.vlgmr.msra.gmra.mrb[0].mxu0 %v89_v27  ;;  %1003 = vmatmul.mubr.bf16.vlgmr.msra.gmra.mrb[0].mxu1 %v89_v27  ;;  %v1135_v27 = vld [vmem:[#allocation5 + $0x1cc] ss:$12 sps:$4 sm:$0xff]  }
  0x5b   :  { %537 = vmatprep.mubr.bf16.mxu0 %v1267_v1  ;;  %1022 = vmatprep.mubr.msk.bf16.mxu1 %vm1268_vm0, %v1266_v0 }
  0x5c   :  { %506 = vmatpush1.bf16.msra.mxu0 %v1089_v29  ;;  %1007 = vmatpush3.bf16.msra.mxu1 %v1092_v30  ;;  %v1136_v29 = vld [vmem:[#allocation5 + $0x1d0] ss:$12 sps:$4 sm:$0xff]  }
  0x5d   :  { %1008 = vmatprep.subr.bf16.mxu1 %v1266_v0  ;;  %507 = vmatprep.subr.bf16.mxu0 %v1095_v31  ;;  %v1139_v30 = vld [vmem:[#allocation5 + $0x1e4] ss:$12 sps:$4 sm:$0xff]   ;;  %v1137_v31 = vld [vmem:[#allocation5 + $0x1e0] ss:$12 sps:$4 sm:$0xff]  }
  0x60   :  { %508 = vmatpush1.bf16.msra.mxu0 %v1093_v32  ;;  %1009 = vmatpush3.bf16.msra.mxu1 %v1096_v33  ;;  %v1140_v32 = vld [vmem:[#allocation5 + $0x1e8] ss:$12 sps:$4 sm:$0xff]  }
  0x61   :  { %1010 = vmatprep.subr.bf16.mxu1 %v1266_v0  ;;  %509 = vmatprep.subr.bf16.mxu0 %v1099_v34  ;;  %v1143_v33 = vld [vmem:[#allocation5 + $0x1fc] ss:$12 sps:$4 sm:$0xff]   ;;  %v1141_v34 = vld [vmem:[#allocation5 + $0x1f8] ss:$12 sps:$4 sm:$0xff]  }
  0x64   :  { %510 = vmatpush1.bf16.msra.mxu0 %v1097_v35  ;;  %1011 = vmatpush3.bf16.msra.mxu1 %v1100_v36  ;;  %v1144_v35 = vld [vmem:[#allocation5 + $0x200] ss:$12 sps:$4 sm:$0xff]  }
  0x65   :  { %1012 = vmatprep.subr.bf16.mxu1 %v1266_v0  ;;  %511 = vmatprep.subr.bf16.mxu0 %v1103_v37  ;;  %v1147_v36 = vld [vmem:[#allocation5 + $0x214] ss:$12 sps:$4 sm:$0xff]   ;;  %v1145_v37 = vld [vmem:[#allocation5 + $0x210] ss:$12 sps:$4 sm:$0xff]  }
  0x68   :  { %512 = vmatpush1.bf16.msra.mxu0 %v1101_v38  ;;  %1013 = vmatpush3.bf16.msra.mxu1 %v1104_v39  ;;  %v1148_v38 = vld [vmem:[#allocation5 + $0x218] ss:$12 sps:$4 sm:$0xff]  }
  0x69   :  { %1014 = vmatprep.subr.bf16.mxu1 %v1266_v0  ;;  %513 = vmatprep.subr.bf16.mxu0 %v1107_v40  ;;  %v1151_v39 = vld [vmem:[#allocation5 + $0x22c] ss:$12 sps:$4 sm:$0xff]   ;;  %v1149_v40 = vld [vmem:[#allocation5 + $0x228] ss:$12 sps:$4 sm:$0xff]  }
  0x6c   :  { %514 = vmatpush1.bf16.msra.mxu0 %v1105_v41  ;;  %1015 = vmatpush3.bf16.msra.mxu1 %v1108_v42  ;;  %v1152_v41 = vld [vmem:[#allocation5 + $0x230] ss:$12 sps:$4 sm:$0xff]   ;;  %v359_v42 = vld [vmem:[#allocation7 + $0x3] sm:$0x7] }
  0x6d   :  { %1016 = vmatprep.subr.bf16.mxu1 %v1266_v0  ;;  %515 = vmatprep.subr.bf16.mxu0 %v1111_v43  ;;  %v365_v43 = vrot.slane %v359_v42, %v1349_v54 }
  0x70   :  { %516 = vmatpush1.bf16.msra.mxu0 %v1109_v44  ;;  %1017 = vmatpush3.bf16.msra.mxu1 %v1112_v45  ;;  %v369_v44 = vrot.slane %v359_v42, %v1351_v56 }
  0x71   :  { %1018 = vmatprep.subr.bf16.mxu1 %v1266_v0  ;;  %517 = vmatprep.subr.bf16.mxu0 %v1115_v46  ;;  %v373_v46 = vrot.slane %v359_v42, %v1353_v57 }
  0x74   :  { %518 = vmatpush1.bf16.msra.mxu0 %v1113_v47  ;;  %1019 = vmatpush3.bf16.msra.mxu1 %v1116_v48 }
  0x75   :  { %1020 = vmatprep.subr.bf16.mxu1 %v1266_v0  ;;  %519 = vmatprep.subr.bf16.mxu0 %v1119_v49 }
  0x78   :  { %520 = vmatpush1.bf16.msra.mxu0 %v1117_v50  ;;  %1021 = vmatpush3.bf16.msra.mxu1 %v1120_v51 }
  0x79   :  { %1026 = vmatprep.subr.bf16.mxu1 %v1266_v0  ;;  %776 = vmatprep.subr.bf16.mxu0 %v1123_v19 }
 0x12d   :  { %v268_v61 = vpop.f32.mrb[0].mxu0  ;;  %v309_v4 = vpop.f32.mrb[0].mxu1 }
 0x12e   :  { %v269_v62 = vadd.f32 %v268_v61, %v94_v58  ;;  %v270_v63 = vpop.f32.mrb[1].mxu0  ;;  %v310_v7 = vadd.f32 %v309_v4, %v102_v60  ;;  %v1004_v8 = vpop.f32.mrb[1].mxu1 }
 0x12f   :  { %v271_v2 = vadd.f32 %v270_v63, %v98_v59  ;;  %v272_v3 = vpop.f32.mrb[2].mxu0  ;;  %v312_v10 = vpop.f32.mrb[2].mxu1 }
 0x130   :  { %v908_v5 = vmul.f32 -1.442695, %v269_v62  ;;  %v273_v6 = vpop.f32.mrb[3].mxu0  ;;  %v1005_v11 = vpop.f32.mrb[3].mxu1 }
 0x131   :  { %v321_v9 = vmax.f32 %v271_v2, 0.0  ;;  %v630_v6 = vld [vmem:[#allocation7 + $0x6] sm:$0x7] }
 0x132   :  { %1153 = vpow2.f32 %v908_v5  ;;  %v640_v8 = vrot.slane %v630_v6, %v1351_v56  ;;  %v644_v10 = vrot.slane %v630_v6, %v1353_v57 }
 0x133   :  { %v322_v12 = vsub.f32 %v321_v9, %v310_v7 }
 0x13c   :  { %v1154_v13 = vpop.eup %1153 }
 0x13d   :  { %v318_v14 = vadd.f32 1.0, %v1154_v13 }
 0x13f   :  { %1155 = vrcp.f32 %v318_v14 }
 0x149   :  { %v1156_v15 = vpop.eup %1155 }
 0x14a   :  { %v323_v16 = vmul.f32 %v1156_v15, %v322_v12 }
 0x14c   :  { %v324_v17 = vadd.f32 %v323_v16, %v310_v7  ;;  %v636_v7 = vrot.slane %v630_v6, %v1349_v54 }
 0x14e   :  { %v360_v18 = vpack.c.bf16 %v324_v17, %v324_v17 }
 0x150   :  { %538 = vmatmul.mubr.bf16.vlgmr.msra.gmra.mrb[4].mxu0 %v360_v18  ;;  %1023 = vmatmul.mubr.bf16.vlgmr.msra.gmra.mrb[4].mxu1 %v360_v18 }
 0x151   :  { %808 = vmatprep.mubr.bf16.mxu0 %v1267_v1  ;;  %1042 = vmatprep.mubr.msk.bf16.mxu1 %vm1268_vm0, %v1266_v0  ;;  %v1129_v1 = vld [vmem:[#allocation5 + $0x1b0] ss:$12 sps:$4 sm:$0xff]  }
 0x152   :  { %777 = vmatpush1.bf16.msra.mxu0 %v1121_v20  ;;  %1027 = vmatpush3.bf16.msra.mxu1 %v1124_v21 }
 0x153   :  { %1028 = vmatprep.subr.bf16.mxu1 %v1266_v0  ;;  %778 = vmatprep.subr.bf16.mxu0 %v1127_v22 }
 0x156   :  { %779 = vmatpush1.bf16.msra.mxu0 %v1125_v23  ;;  %1029 = vmatpush3.bf16.msra.mxu1 %v1128_v24 }
 0x157   :  { %1030 = vmatprep.subr.bf16.mxu1 %v1266_v0  ;;  %780 = vmatprep.subr.bf16.mxu0 %v1131_v25 }
 0x15a   :  { %781 = vmatpush1.bf16.msra.mxu0 %v1129_v1  ;;  %1031 = vmatpush3.bf16.msra.mxu1 %v1132_v26 }
 0x15b   :  { %1032 = vmatprep.subr.bf16.mxu1 %v1266_v0  ;;  %782 = vmatprep.subr.bf16.mxu0 %v1135_v27 }
 0x15e   :  { %783 = vmatpush1.bf16.msra.mxu0 %v1133_v28  ;;  %1033 = vmatpush3.bf16.msra.mxu1 %v1136_v29 }
 0x15f   :  { %1034 = vmatprep.subr.bf16.mxu1 %v1266_v0  ;;  %784 = vmatprep.subr.bf16.mxu0 %v1139_v30 }
 0x162   :  { %785 = vmatpush1.bf16.msra.mxu0 %v1137_v31  ;;  %1035 = vmatpush3.bf16.msra.mxu1 %v1140_v32 }
 0x163   :  { %1036 = vmatprep.subr.bf16.mxu1 %v1266_v0  ;;  %786 = vmatprep.subr.bf16.mxu0 %v1143_v33 }
 0x166   :  { %787 = vmatpush1.bf16.msra.mxu0 %v1141_v34  ;;  %1037 = vmatpush3.bf16.msra.mxu1 %v1144_v35 }
 0x167   :  { %1038 = vmatprep.subr.bf16.mxu1 %v1266_v0  ;;  %788 = vmatprep.subr.bf16.mxu0 %v1147_v36 }
 0x16a   :  { %789 = vmatpush1.bf16.msra.mxu0 %v1145_v37  ;;  %1039 = vmatpush3.bf16.msra.mxu1 %v1148_v38 }
 0x16b   :  { %1040 = vmatprep.subr.bf16.mxu1 %v1266_v0  ;;  %790 = vmatprep.subr.bf16.mxu0 %v1151_v39 }
 0x16e   :  { %791 = vmatpush1.bf16.msra.mxu0 %v1149_v40  ;;  %1041 = vmatpush3.bf16.msra.mxu1 %v1152_v41 }
 0x223   :  { %v539_v45 = vpop.f32.mrb[4].mxu0  ;;  %v580_v47 = vpop.f32.mrb[4].mxu1 }
 0x224   :  { %v540_v48 = vadd.f32 %v539_v45, %v365_v43  ;;  %v541_v49 = vpop.f32.mrb[5].mxu0  ;;  %v1024_v50 = vpop.f32.mrb[5].mxu1  ;;  %v581_v59 = vadd.f32 %v580_v47, %v373_v46 }
 0x225   :  { %v542_v51 = vadd.f32 %v541_v49, %v369_v44  ;;  %v543_v52 = vpop.f32.mrb[6].mxu0  ;;  %v583_v0 = vpop.f32.mrb[6].mxu1 }
 0x226   :  { %v933_v53 = vmul.f32 -1.442695, %v540_v48  ;;  %v544_v55 = vpop.f32.mrb[7].mxu0  ;;  %v1025_v58 = vpop.f32.mrb[7].mxu1 }
 0x227   :  { %v592_v60 = vmax.f32 %v542_v51, 0.0 }
 0x228   :  { %1157 = vpow2.f32 %v933_v53 }
 0x229   :  { %v593_v61 = vsub.f32 %v592_v60, %v581_v59 }
 0x232   :  { %v1158_v62 = vpop.eup %1157 }
 0x233   :  { %v589_v63 = vadd.f32 1.0, %v1158_v62 }
 0x235   :  { %1159 = vrcp.f32 %v589_v63 }
 0x23f   :  { %v1160_v2 = vpop.eup %1159 }
 0x240   :  { %v594_v3 = vmul.f32 %v1160_v2, %v593_v61 }
 0x242   :  { %v595_v4 = vadd.f32 %v594_v3, %v581_v59 }
 0x244   :  { %v631_v5 = vpack.c.bf16 %v595_v4, %v595_v4 }
 0x246   :  { %809 = vmatmul.mubr.bf16.vlgmr.msra.gmra.mrb[8].mxu0 %v631_v5  ;;  %1043 = vmatmul.mubr.bf16.vlgmr.msra.gmra.mrb[8].mxu1 %v631_v5 }
 0x319   :  { %v810_v9 = vpop.f32.mrb[8].mxu0  ;;  %v851_v11 = vpop.f32.mrb[8].mxu1 }
 0x31a   :  { %v811_v12 = vadd.f32 %v810_v9, %v636_v7  ;;  %v812_v13 = vpop.f32.mrb[9].mxu0  ;;  %v1044_v14 = vpop.f32.mrb[9].mxu1  ;;  %v852_v21 = vadd.f32 %v851_v11, %v644_v10 }
 0x31b   :  { %v813_v15 = vadd.f32 %v812_v13, %v640_v8  ;;  %v814_v16 = vpop.f32.mrb[10].mxu0  ;;  %v854_v17 = vpop.f32.mrb[10].mxu1 }
 0x31c   :  { %v958_v18 = vmul.f32 -1.442695, %v811_v12  ;;  %v815_v19 = vpop.f32.mrb[11].mxu0  ;;  %v1045_v20 = vpop.f32.mrb[11].mxu1 }
 0x31d   :  { %v863_v22 = vmax.f32 %v813_v15, 0.0 }
 0x31e   :  { %1161 = vpow2.f32 %v958_v18 }
 0x31f   :  { %v864_v23 = vsub.f32 %v863_v22, %v852_v21 }
 0x328   :  { %v1162_v54 = vpop.eup %1161 }
 0x329   :  { %v860_v24 = vadd.f32 1.0, %v1162_v54 }
 0x32b   :  { %1163 = vrcp.f32 %v860_v24 }
 0x335   :  { %v1164_v56 = vpop.eup %1163 }
 0x336   :  { %v865_v57 = vmul.f32 %v1164_v56, %v864_v23 }
 0x338   :  { %v866_v25 = vadd.f32 %v865_v57, %v852_v21 }
 0x33a   :  { %867 = vst [vmem:[#allocation8] sm:$0xff] %v866_v25 }
 0x33b   :  { %1242 = shalt.err (!%p1239_p0)
}
 0x33c   :  { %s1243_s28 = scalar_lea.hbm %s1389_s3, 128 }
 0x33d   :  { %p1244_p1 = scmp.ne.s32.totalorder %s1389_s3, %s1243_s28  ;;  %p1247_p2 = scmp.lt.u32.totalorder %s1243_s28, %s1389_s3 }
 0x33f   :  { %p1249_p3 = pnand %p1247_p2, %p1244_p1 }
 0x341   :  { %1252 = shalt.err (!%p1249_p3)
}
 0x342   :  { %877 = dma.vmem_to_hbm [thread:$0]  %s875_s24, 128, %s1389_s3, [#allocation4]  }
 0x343   :  { %1257 = dma.done.wait [#allocation4], 128  }
 0x344   :  { %1258 = vsyncadd [#allocation4], 4294967168 }
 0x345   :  { %881 = vsyncpa [#allocation3], 1 }
 0x346   :  { %882 = vsyncpa [#allocation6], 1 }
 0x347   :  { %883 = vsyncpa [#allocation4], 1 }

</bundles_post_ra>
